<compile_context>
chip_gen: v7x
topology: tpu7x:2x2x1
jax: 0.10.0
libtpu: 0.0.40
codegen_flags: <defaults>
</compile_context>

<pallas_src>
import functools

import jax
import jax.numpy as jnp
from jax import lax
from jax.experimental import pallas as pl
from jax.experimental.pallas import tpu as pltpu

_MIB = 1024 * 1024


# ---------------------------------------------------------------------------
# Main single-pass kernel: one grid step sees a full (tb, C, HW) slab.
# ---------------------------------------------------------------------------
def _se_kernel(x_ref, w1_ref, b1_ref, w2_ref, b2_ref, o_ref):
    x = x_ref[...]                                     # (tb, C, HW), input dtype

    # Squeeze: spatial SUM with f32 accumulation (1/HW folded into w1).
    s = jnp.sum(x, axis=-1, dtype=jnp.float32)         # (tb, C)

    # Excitation: fc1 -> relu -> fc2 -> sigmoid (tiny, f32).
    h = jnp.dot(s, w1_ref[...], preferred_element_type=jnp.float32) + b1_ref[...]
    h = jnp.maximum(h, 0.0)                            # (tb, Cr)
    g = jnp.dot(h, w2_ref[...], preferred_element_type=jnp.float32) + b2_ref[...]
    gate = jax.nn.sigmoid(g)                           # (tb, C), f32

    # Scale: gating multiply in the input dtype (keeps packed vregs for bf16).
    o_ref[...] = x * gate.astype(x.dtype)[:, :, None]


# ---------------------------------------------------------------------------
# Two-phase fallback kernels (single sample too large for one VMEM block).
# ---------------------------------------------------------------------------
def _se_squeeze_gate_kernel(x_ref, w1_ref, b1_ref, w2_ref, b2_ref, gate_ref,
                            acc_ref, *, hw_total, thw):
    hi = pl.program_id(1)

    @pl.when(hi == 0)
    def _():
        acc_ref[...] = jnp.zeros_like(acc_ref)

    x = x_ref[...]                                     # (tb, C, thw)
    lane = lax.broadcasted_iota(jnp.int32, x.shape, 2)
    valid = (hi * thw + lane) < hw_total               # mask ragged tail chunk
    xm = jnp.where(valid, x, jnp.zeros_like(x))
    acc_ref[...] += jnp.sum(xm, axis=-1, dtype=jnp.float32)

    @pl.when(hi == pl.num_programs(1) - 1)
    def _():
        s = acc_ref[...]                               # (tb, C); 1/HW is in w1
        h = jnp.dot(s, w1_ref[...], preferred_element_type=jnp.float32) + b1_ref[...]
        h = jnp.maximum(h, 0.0)
        g = jnp.dot(h, w2_ref[...], preferred_element_type=jnp.float32) + b2_ref[...]
        gate_ref[...] = jax.nn.sigmoid(g)[:, None, :]  # (tb, 1, C)


def _se_scale_kernel(x_ref, gate_ref, o_ref):
    x = x_ref[...]                                     # (tb, C, thw)
    gate = gate_ref[...][:, 0, :].astype(x.dtype)      # (tb, C)
    o_ref[...] = x * gate[:, :, None]


# ---------------------------------------------------------------------------
# Sizing helpers.
# ---------------------------------------------------------------------------
def _vmem_budgets():
    """Generation-aware (block byte target, vmem_limit cap)."""
    try:
        cap = int(pltpu.get_tpu_info().vmem_capacity_bytes)
    except Exception:
        cap = 64 * _MIB                                # assume smallest (v7x)
    if cap <= 64 * _MIB:                               # v7x-class TensorCore
        return 3 * _MIB, 48 * _MIB
    return 12 * _MIB, 100 * _MIB                       # v5e / v6e (128 MiB VMEM)


def _pick_tb(batch, bytes_per_sample, block_target_bytes):
    """Largest divisor of `batch` whose block fits the byte target, preferring
    at least 2 grid steps so pipelining / megacore sharding stay alive."""
    divisors = [d for d in range(1, batch + 1) if batch % d == 0]
    fitting = [d for d in divisors if d * bytes_per_sample <= block_target_bytes]
    if not fitting:
        return None                                    # one sample is too big
    multi_step = [d for d in fitting if batch // d >= 2]
    return max(multi_step) if multi_step else max(fitting)


# ---------------------------------------------------------------------------
# Wrapper.
# ---------------------------------------------------------------------------
def channel_se_layer(x, w1, b1, w2, b2, *, force_two_phase=False,
                     two_phase_thw=None):
    """SE forward.  x: (B, C, H, W).  Weights stored transposed vs PyTorch:
    w1: (C, Cr), b1: (Cr,), w2: (Cr, C), b2: (C,)."""
    B, C, H, W = x.shape
    Cr = w1.shape[1]
    HW = H * W
    x_flat = x.reshape(B, C, HW)
    itemsize = jnp.dtype(x.dtype).itemsize

    # Fold the 1/(H*W) mean normalization into fc1's weights (exact in f32).
    w1_scaled = w1.astype(jnp.float32) / float(HW)
    b1_2d = b1.reshape(1, Cr).astype(jnp.float32)
    w2_f = w2.astype(jnp.float32)
    b2_2d = b2.reshape(1, C).astype(jnp.float32)
    weight_bytes = (C * Cr + Cr + Cr * C + C) * 4

    block_target, vmem_cap = _vmem_budgets()
    bytes_per_sample = C * HW * itemsize
    tb = None if force_two_phase else _pick_tb(B, bytes_per_sample, block_target)

    if tb is not None:
        # ----- single-pass path: one HBM read + one HBM write of x -----
        block_bytes = tb * bytes_per_sample
        vmem_limit = int(min(vmem_cap,
                             max(32 * _MIB,
                                 4 * block_bytes + 4 * weight_bytes + 2 * _MIB)))
        cost = pl.CostEstimate(
            flops=2 * B * C * HW + 4 * B * C * Cr,     # reduce + gate mul + 2 matmuls
            transcendentals=B * C,                     # sigmoid
            bytes_accessed=2 * B * C * HW * itemsize + weight_bytes,
        )
        out_flat = pl.pallas_call(
            _se_kernel,
            out_shape=jax.ShapeDtypeStruct((B, C, HW), x.dtype),
            grid=(B // tb,),
            in_specs=[
                pl.BlockSpec((tb, C, HW), lambda b: (b, 0, 0)),  # x: streamed
                pl.BlockSpec((C, Cr), lambda b: (0, 0)),         # w1 (resident)
                pl.BlockSpec((1, Cr), lambda b: (0, 0)),         # b1 (resident)
                pl.BlockSpec((Cr, C), lambda b: (0, 0)),         # w2 (resident)
                pl.BlockSpec((1, C), lambda b: (0, 0)),          # b2 (resident)
            ],
            out_specs=pl.BlockSpec((tb, C, HW), lambda b: (b, 0, 0)),
            compiler_params=pltpu.CompilerParams(
                dimension_semantics=("parallel",),
                vmem_limit_bytes=vmem_limit,
            ),
            cost_estimate=cost,
            # Note: when the caller donates x, add input_output_aliases={0: 0}.
        )(x_flat, w1_scaled, b1_2d, w2_f, b2_2d)
        return out_flat.reshape(B, C, H, W)

    # ----- two-phase fallback: one sample exceeds the VMEM block budget -----
    if two_phase_thw is not None:
        assert two_phase_thw % 128 == 0
        thw = two_phase_thw
    else:
        thw = max(128, (block_target // max(1, C * itemsize)) // 128 * 128)
    if thw >= HW:
        thw = HW                                       # one full-HW chunk
    n_hw = pl.cdiv(HW, thw)
    tb_fb = 1
    block_bytes = tb_fb * C * thw * itemsize
    vmem_limit = int(min(vmem_cap,
                         max(32 * _MIB,
                             4 * block_bytes + 4 * weight_bytes + 2 * _MIB)))

    gates = pl.pallas_call(
        functools.partial(_se_squeeze_gate_kernel, hw_total=HW, thw=thw),
        out_shape=jax.ShapeDtypeStruct((B, 1, C), jnp.float32),
        grid=(B // tb_fb, n_hw),
        in_specs=[
            pl.BlockSpec((tb_fb, C, thw), lambda b, h: (b, 0, h)),
            pl.BlockSpec((C, Cr), lambda b, h: (0, 0)),
            pl.BlockSpec((1, Cr), lambda b, h: (0, 0)),
            pl.BlockSpec((Cr, C), lambda b, h: (0, 0)),
            pl.BlockSpec((1, C), lambda b, h: (0, 0)),
        ],
        out_specs=pl.BlockSpec((tb_fb, 1, C), lambda b, h: (b, 0, 0)),
        scratch_shapes=[pltpu.VMEM((tb_fb, C), jnp.float32)],
        compiler_params=pltpu.CompilerParams(
            dimension_semantics=("parallel", "arbitrary"),
            vmem_limit_bytes=vmem_limit,
        ),
    )(x_flat, w1_scaled, b1_2d, w2_f, b2_2d)

    out_flat = pl.pallas_call(
        _se_scale_kernel,
        out_shape=jax.ShapeDtypeStruct((B, C, HW), x.dtype),
        grid=(B // tb_fb, n_hw),
        in_specs=[
            pl.BlockSpec((tb_fb, C, thw), lambda b, h: (b, 0, h)),
            pl.BlockSpec((tb_fb, 1, C), lambda b, h: (b, 0, 0)),
        ],
        out_specs=pl.BlockSpec((tb_fb, C, thw), lambda b, h: (b, 0, h)),
        compiler_params=pltpu.CompilerParams(
            dimension_semantics=("parallel", "parallel"),
            vmem_limit_bytes=vmem_limit,
        ),
    )(x_flat, gates)
    return out_flat.reshape(B, C, H, W)


def _reference(x, w1, b1, w2, b2):
    sq = x.reshape(x.shape[0], x.shape[1], -1).mean(axis=2)
    h = jnp.maximum(sq @ w1 + b1, 0.0)
    g = jax.nn.sigmoid(h @ w2 + b2)
    return x * g.reshape(x.shape[0], x.shape[1], 1, 1)


if __name__ == "__main__":
    B, C, H, W = 2, 4, 16, 16
    reduction_ratio = 2
    Cr = C // reduction_ratio

    key = jax.random.PRNGKey(0)
    kx, k1, k2, k3, k4, kx2 = jax.random.split(key, 6)

    x = jax.random.normal(kx, (B, C, H, W), dtype=jnp.float32)

    # Deterministic "PyTorch-like" Linear init (uniform in +-1/sqrt(fan_in)).
    bound1 = 1.0 / (C ** 0.5)
    bound2 = 1.0 / (Cr ** 0.5)
    w1 = jax.random.uniform(k1, (C, Cr), minval=-bound1, maxval=bound1, dtype=jnp.float32)
    b1 = jax.random.uniform(k2, (Cr,), minval=-bound1, maxval=bound1, dtype=jnp.float32)
    w2 = jax.random.uniform(k3, (Cr, C), minval=-bound2, maxval=bound2, dtype=jnp.float32)
    b2 = jax.random.uniform(k4, (C,), minval=-bound2, maxval=bound2, dtype=jnp.float32)

    # Main single-pass path.
    out = jax.block_until_ready(channel_se_layer(x, w1, b1, w2, b2))
    ref = _reference(x, w1, b1, w2, b2)
    assert out.shape == (B, C, H, W)
    assert jnp.allclose(out, ref, atol=1e-5, rtol=1e-5), "mismatch vs reference (main path)"

    # Two-phase fallback path (forced; ragged HW chunking: 196 -> 2x128 chunks).
    H2 = W2 = 14
    x2 = jax.random.normal(kx2, (B, C, H2, W2), dtype=jnp.float32)
    out2 = jax.block_until_ready(
        channel_se_layer(x2, w1, b1, w2, b2, force_two_phase=True, two_phase_thw=128))
    ref2 = _reference(x2, w1, b1, w2, b2)
    assert out2.shape == (B, C, H2, W2)
    assert jnp.allclose(out2, ref2, atol=1e-5, rtol=1e-5), "mismatch vs reference (two-phase)"

    print("KERNEL_OK")
</pallas_src>

<mosaic_0001>
module attributes {stable_mosaic.version = 11 : i64} {
  func.func @_se_kernel(%arg0: i32, %arg1: memref<1x4x256xf32, #tpu.memory_space<vmem>>, %arg2: memref<4x2xf32, #tpu.memory_space<vmem>>, %arg3: memref<1x2xf32, #tpu.memory_space<vmem>>, %arg4: memref<2x4xf32, #tpu.memory_space<vmem>>, %arg5: memref<1x4xf32, #tpu.memory_space<vmem>>, %arg6: memref<1x4x256xf32, #tpu.memory_space<vmem>>) attributes {dimension_semantics = [#tpu.dimension_semantics<parallel>], iteration_bounds = array<i64: 2>, scalar_prefetch = 0 : i64, scratch_operands = 0 : i64, tpu.core_type = #tpu.core_type<tc>, window_params = [{transform_indices = @transform_0, window_bounds = array<i64: 1, 4, 256>}, {pipeline_mode = #tpu.pipeline_mode<synchronous>, transform_indices = @transform_1, window_bounds = array<i64: 4, 2>}, {pipeline_mode = #tpu.pipeline_mode<synchronous>, transform_indices = @transform_2, window_bounds = array<i64: 1, 2>}, {pipeline_mode = #tpu.pipeline_mode<synchronous>, transform_indices = @transform_3, window_bounds = array<i64: 2, 4>}, {pipeline_mode = #tpu.pipeline_mode<synchronous>, transform_indices = @transform_4, window_bounds = array<i64: 1, 4>}, {transform_indices = @transform_5, window_bounds = array<i64: 1, 4, 256>}]} {
    %c0 = arith.constant 0 : index
    %c0_0 = arith.constant 0 : index
    %c0_1 = arith.constant 0 : index
    %0 = vector.load %arg1[%c0, %c0_0, %c0_1] : memref<1x4x256xf32, #tpu.memory_space<vmem>>, vector<1x4x256xf32>
    %cst = arith.constant dense<0.000000e+00> : vector<1x4xf32>
    %1 = vector.multi_reduction <add>, %0, %cst [2] : vector<1x4x256xf32> to vector<1x4xf32>
    %c0_2 = arith.constant 0 : index
    %c0_3 = arith.constant 0 : index
    %2 = vector.load %arg2[%c0_2, %c0_3] : memref<4x2xf32, #tpu.memory_space<vmem>>, vector<4x2xf32>
    %cst_4 = arith.constant dense<0.000000e+00> : vector<1x2xf32>
    %3 = tpu.matmul %1, %2, %cst_4 {dimension_numbers = #tpu.dot_dimension_numbers<[1], [0], [0], [1], [0, 0, 1, 1], [], []>} : vector<1x4xf32>, vector<4x2xf32>, vector<1x2xf32> -> vector<1x2xf32>
    %c0_5 = arith.constant 0 : index
    %c0_6 = arith.constant 0 : index
    %4 = vector.load %arg3[%c0_5, %c0_6] : memref<1x2xf32, #tpu.memory_space<vmem>>, vector<1x2xf32>
    %5 = arith.addf %3, %4 : vector<1x2xf32>
    %cst_7 = arith.constant 0.000000e+00 : f32
    %6 = vector.broadcast %cst_7 : f32 to vector<1x2xf32>
    %7 = arith.maximumf %5, %6 : vector<1x2xf32>
    %c0_8 = arith.constant 0 : index
    %c0_9 = arith.constant 0 : index
    %8 = vector.load %arg4[%c0_8, %c0_9] : memref<2x4xf32, #tpu.memory_space<vmem>>, vector<2x4xf32>
    %cst_10 = arith.constant dense<0.000000e+00> : vector<1x4xf32>
    %9 = tpu.matmul %7, %8, %cst_10 {dimension_numbers = #tpu.dot_dimension_numbers<[1], [0], [0], [1], [0, 0, 1, 1], [], []>} : vector<1x2xf32>, vector<2x4xf32>, vector<1x4xf32> -> vector<1x4xf32>
    %c0_11 = arith.constant 0 : index
    %c0_12 = arith.constant 0 : index
    %10 = vector.load %arg5[%c0_11, %c0_12] : memref<1x4xf32, #tpu.memory_space<vmem>>, vector<1x4xf32>
    %11 = arith.addf %9, %10 : vector<1x4xf32>
    %12 = arith.negf %11 : vector<1x4xf32>
    %13 = math.exp %12 : vector<1x4xf32>
    %cst_13 = arith.constant 1.000000e+00 : f32
    %14 = vector.broadcast %cst_13 : f32 to vector<1x4xf32>
    %15 = arith.addf %14, %13 : vector<1x4xf32>
    %16 = arith.divf %14, %15 : vector<1x4xf32>
    %17 = vector.shape_cast %16 : vector<1x4xf32> to vector<1x4x1xf32>
    %18 = vector.broadcast %17 : vector<1x4x1xf32> to vector<1x4x256xf32>
    %19 = arith.mulf %0, %18 : vector<1x4x256xf32>
    %c0_14 = arith.constant 0 : index
    %c0_15 = arith.constant 0 : index
    %c0_16 = arith.constant 0 : index
    %20 = vector.load %arg6[%c0_14, %c0_15, %c0_16] : memref<1x4x256xf32, #tpu.memory_space<vmem>>, vector<1x4x256xf32>
    tpu.vector_store %arg6[%c0_14, %c0_15, %c0_16], %19 {strides = array<i32>} : memref<1x4x256xf32, #tpu.memory_space<vmem>>, vector<1x4x256xf32>,
    return
  }
  func.func @transform_0(%arg0: i32) -> (i32, i32, i32) {
    %c0_i32 = arith.constant 0 : i32
    %c0_i32_0 = arith.constant 0 : i32
    %c0_i32_1 = arith.constant 0 : i32
    return %arg0, %c0_i32, %c0_i32_0 : i32, i32, i32
  }
  func.func @transform_1(%arg0: i32) -> (i32, i32) {
    %c0_i32 = arith.constant 0 : i32
    %c0_i32_0 = arith.constant 0 : i32
    %c0_i32_1 = arith.constant 0 : i32
    return %c0_i32, %c0_i32_0 : i32, i32
  }
  func.func @transform_2(%arg0: i32) -> (i32, i32) {
    %c0_i32 = arith.constant 0 : i32
    %c0_i32_0 = arith.constant 0 : i32
    %c0_i32_1 = arith.constant 0 : i32
    return %c0_i32, %c0_i32_0 : i32, i32
  }
  func.func @transform_3(%arg0: i32) -> (i32, i32) {
    %c0_i32 = arith.constant 0 : i32
    %c0_i32_0 = arith.constant 0 : i32
    %c0_i32_1 = arith.constant 0 : i32
    return %c0_i32, %c0_i32_0 : i32, i32
  }
  func.func @transform_4(%arg0: i32) -> (i32, i32) {
    %c0_i32 = arith.constant 0 : i32
    %c0_i32_0 = arith.constant 0 : i32
    %c0_i32_1 = arith.constant 0 : i32
    return %c0_i32, %c0_i32_0 : i32, i32
  }
  func.func @transform_5(%arg0: i32) -> (i32, i32, i32) {
    %c0_i32 = arith.constant 0 : i32
    %c0_i32_0 = arith.constant 0 : i32
    %c0_i32_1 = arith.constant 0 : i32
    return %arg0, %c0_i32, %c0_i32_0 : i32, i32, i32
  }
}

</mosaic_0001>

<bundles_post_ra>
// kernel: tpu_custom_call.1
= control target key start
LH: loop header
LB: loop body
LE: loop exit
PB: predicated region body
PF: predicated region fallthrough
CT: control target
= control target key end

     0   :  { %10 = vsyncpa [#allocation3], 0  ;;  %s925_s0 = inlined_call_operand.hbm [shape: f32[2,4,256], index: 0, kind: input, shape index: {}]   ;;  %s926_s1 = inlined_call_operand.vmem [shape: f32[4,2], index: 1, kind: input, shape index: {}]   ;;  %s927_s2 = inlined_call_operand.vmem [shape: f32[1,2], index: 2, kind: input, shape index: {}]   ;;  %s928_s3 = inlined_call_operand.vmem [shape: f32[2,4], index: 3, kind: input, shape index: {}]   ;;  %s929_s4 = inlined_call_operand.vmem [shape: f32[1,4], index: 4, kind: input, shape index: {}]   ;;  %s930_s5 = inlined_call_operand.hbm [shape: f32[2,4,256], index: 5, kind: output, shape index: {}]  }
   0x1   :  { %12 = vsyncpa [#allocation3 + $0x1], 0 }
   0x2   :  { %13 = vsyncpa [#allocation4], 0 }
   0x3   :  { %15 = vsyncpa [#allocation4 + $0x1], 0  ;;  %s748_s18 = smov 0   ;;  %s750_s19 = smov 0  }
   0x4   :  { %s752_s20 = smov 0   ;;  %s754_s21 = smov 0  }
   0x5 LB: > { %s769_s22 = sadd.s32 4294967295, %s711_s21   ;;  %s526_s23 = sadd.s32 4294967294, %s711_s21   ;;  %s711_s21 = sphi %s754_s21, %s945_s21   ;;  %s707_s20 = sphi %s752_s20, %s944_s20   ;;  %s703_s19 = sphi %s750_s19, %s943_s19   ;;  %s699_s18 = sphi %s748_s18, %s942_s18  }
   0x6   : > { %s773_s24 = sadd.s32 1, %s711_s21   ;;  %s28_s25 = sadd.s32 1, %s707_s20 }
   0x7   : > { %s25_s26 = ssub.s32 %s711_s21, %s773_s24  ;;  %p35_p0 = scmp.ne.s32.totalorder %s707_s20, %s703_s19 }
   0x8   : > { %p26_p1 = scmp.eq.s32.totalorder %s25_s26, 0  ;;  %p36_p2 = scmp.eq.s32.totalorder %s711_s21, 0 }
   0x9   : > { %p41_p3 = scmp.ne.s32.totalorder %s703_s19, %s699_s18  ;;  %p42_p4 = scmp.eq.s32.totalorder %s769_s22, 0 }
   0xa   : > { %s785_s27 = scalar_select %p26_p1, %s707_s20, %s28_s25  }
   0xb   : > { %p787_p5 = por %p36_p2, %p35_p0  ;;  %p791_p6 = por %p42_p4, %p41_p3 }
   0xc   : > { %p149_p7 = scmp.eq.s32.totalorder %s769_s22, 1  ;;  %p155_p8 = scmp.eq.s32.totalorder %s526_s23, 1 }
   0xd   : > { %p573_p10 = scmp.lt.s32.totalorder %s711_s21, 2  ;;  %s187_s7 = sand.u32 1, %s707_s20  }
   0xe   : > { %p798_p11 = por %p149_p7, %p35_p0  ;;  %p802_p12 = por %p155_p8, %p41_p3 }
   0xf   : > { %s545_s8 = sshll.u32 %s711_s21, 7  ;;  %s529_s9 = sshll.u32 %s187_s7, 3 }
  0x10   : > { %s934_s30 = scalar_select %p798_p11, 1, 0 }
  0x11   : > { %s935_s6 = scalar_select %p802_p12, 1, 0 }
  0x12   : > { %s811_s12 = scalar_lea.hbm %s925_s0, %s545_s8  ;;  %s191_s13 = scalar_lea.vmem [#allocation2], %s529_s9 }
  0x13   : > { %s199_s14 = sshll.u32 %s191_s13, 4  ;;  %p815_p13 = pnand %p573_p10, %p787_p5  ;;  %s819_s14 = int_to_ptr.vmem [resolvable:$true] %s199_s14 }
  0x14   : > { %s188_s16 = scalar_lea.sflag [#allocation3], %s187_s7  ;;  %s615_s17 = scalar_lea.hbm %s811_s12, 128 }
  0x15   : > { %p616_p2 = scmp.ne.s32.totalorder %s811_s12, %s615_s17  ;;  %p617_p3 = pneg %p815_p13 }
  0x16   : > { %s620_s26 = scalar_lea.hbm %s925_s0, 256  ;;  %p621_p5 = scmp.lt.u32.totalorder %s811_s12, %s925_s0 }
  0x17   : > { %p618_p4 = pnand %p617_p3, %p616_p2  ;;  %p622_p8 = scmp.lt.u32.totalorder %s620_s26, %s615_s17 }
  0x18   : > { %p624_p9 = scmp.lt.u32.totalorder %s615_s17, %s811_s12 }
  0x19   : > { %p619_p7 = pneg %p618_p4  ;;  %p623_p10 = por %p622_p8, %p621_p5 }
  0x1b   : > { %p625_p0 = por %p624_p9, %p623_p10 }
  0x1d   : > { %p626_p1 = pnand %p625_p0, %p619_p7 }
  0x1f   : > { %629 = shalt.err (!%p626_p1)
}
  0x20   : > { %s630_s7 = scalar_lea.vmem %s819_s14, 128  ;;  %s713_s9 = smov [#allocation2]  }
  0x21   : > { %p631_p2 = scmp.ne.s32.totalorder %s819_s14, %s630_s7  ;;  %s635_s10 = sshll.u32 %s713_s9, 4  ;;  %s636_s10 = int_to_ptr.vmem [resolvable:$false] %s635_s10 }
  0x22   : > { %s637_s11 = scalar_lea.vmem %s636_s10, 256  ;;  %p638_p11 = scmp.lt.s32.totalorder %s819_s14, %s636_s10 }
  0x23   : > { %p633_p4 = pnand %p631_p2, %p617_p3  ;;  %p639_p5 = scmp.lt.s32.totalorder %s637_s11, %s630_s7 }
  0x25   : > { %p634_p12 = pneg %p633_p4  ;;  %p640_p8 = por %p639_p5, %p638_p11 }
  0x27   : > { %p641_p9 = pnand %p640_p8, %p634_p12 }
  0x29   : > { %644 = shalt.err (!%p641_p9)
}
  0x2a   : > { %568 = dma.hbm_to_vmem [thread:$0]  (!%p815_p13), %s811_s12, 128, %s819_s14, %s188_s16  }
  0x2b   : > { %p937_p0 = scmp.lt.s32.totalorder %s711_s21, 3  ;;  %p938_p1 = scmp.ge.s32.totalorder %s711_s21, 1 }
  0x2d   : > { %p205_p3 = pnand %p938_p1, %p937_p0 }
  0x2e   : > { %s853_s13 = sand.u32 (!%p205_p3), 1, %s703_s19  }
  0x2f   : > { %208 = sbr.rel (%p205_p3) target bundleno = 796 (0x31c), region = 40  ;;  %s533_s17 = sshll.u32 (!%p205_p3), %s853_s13, 3 }
  0x30   : > { %s211_s23 = scalar_lea.sflag (!%p205_p3), [#allocation3], %s853_s13  ;;  %s214_s15 = scalar_lea.vmem (!%p205_p3), [#allocation2], %s533_s17 }
  0x36   : > { %690 = dma.done.wait (%p791_p6), %s211_s23, 128  }
  0x37   : > { %692 = vsyncadd (%p791_p6), %s211_s23, 4294967168  ;;  %vm245_vm0 = vcmask 1043456   ;;  %v241_v0 = vld [vmem:[%s214_s15] sm:$0xff]  ;;  %v714_v5 = vmov 0.0   ;;  %vm715_vm1 = vmmov 0   ;;  %v254_v7 = vlaneseq  ;;  %s546_s7 = sshll.u32 %s769_s22, 7 }
  0x38   : > { %v243_v1 = vcombine.high %v241_v0, %v241_v0  ;;  %v246_v2 = vsel %vm245_vm0, %v241_v0, 0.0  ;;  %551 = vmatprep.subr.mxu0 %v714_v5  ;;  %v251_v6 = vld [vmem:[%s926_s1] sm:$0xf]  ;;  %556 = vmatprep.subr.mxu1 %v714_v5  ;;  %vm260_vm2 = vcmask 31744   ;;  %vm343_vm3 = vcmask 1041408   ;;  %s240_s9 = scalar_lea.vmem [#allocation5], %s533_s17  ;;  %s881_s15 = scalar_lea.hbm %s930_s5, %s546_s7 }
  0x39   : > { %552 = vmatpush3.msk.msra.mxu0 %vm245_vm0, %v251_v6  ;;  %553 = vmatprep.mubr.msk.f32.mxu0 %vm715_vm1, %v714_v5  ;;  %v255_v8 = vand.u32 127, %v254_v7  ;;  %v257_v9 = vshrl.u32 %v254_v7, 7  ;;  %v337_v13 = vld [vmem:[%s928_s3] sm:$0x3]  ;;  %vm339_vm4 = vcmask 15360   ;;  %s456_s10 = sshll.u32 %s240_s9, 4  ;;  %s883_s10 = int_to_ptr.vmem [resolvable:$true] %s456_s10 }
  0x3a   : > { %v247_v3 = vsel %vm245_vm0, %v243_v1, 0.0  ;;  %558 = vmatprep.mubr.msk.f32.mxu1 %vm715_vm1, %v714_v5  ;;  %557 = vmatpush3.msk.msra.mxu1 %vm343_vm3, %v337_v13  ;;  %v252_v14 = vld [vmem:[%s927_s2] sm:$0x1]  ;;  %v716_v29 = vmov 839922192   ;;  %s442_s12 = scalar_lea.sflag [#allocation4], %s853_s13 }
  0x3b   : > { %v248_v4 = vadd.f32 %v247_v3, %v246_v2  ;;  %v258_v10 = vsub.s32 %v255_v8, %v257_v9  ;;  %v338_v19 = vld [vmem:[%s929_s4] sm:$0x1]  ;;  %v425_v26 = vsub.s32 0, %v257_v9  ;;  %v432_v30 = vunpack.c.l.s4 %v716_v29  ;;  %s645_s14 = scalar_lea.vmem %s883_s10, 128  ;;  %p939_p11 = scmp.ne.s32.totalorder %s934_s30, 0 }
  0x3c   : > { %p646_p6 = scmp.ne.s32.totalorder %s883_s10, %s645_s14  ;;  %s717_s22 = smov [#allocation5]  }
  0x3d   : > { %249 = vadd.xlane.f32.xlu0 %v248_v4  ;;  %v433_v31 = vunpack.c.0.s8 %v432_v30  ;;  %s649_s17 = sshll.u32 %s717_s22, 4  ;;  %s650_s17 = int_to_ptr.vmem [resolvable:$false] %s649_s17 }
  0x3e   : > { %p647_p12 = pnand %p646_p6, %p939_p11  ;;  %s651_s29 = scalar_lea.vmem %s650_s17, 256 }
  0x3f   : > { %v436_v32 = vsub.s32 %v433_v31, %v257_v9  ;;  %p652_p7 = scmp.lt.s32.totalorder %s883_s10, %s650_s17  ;;  %p653_p10 = scmp.lt.s32.totalorder %s651_s29, %s645_s14 }
  0x40   : > { %p648_p13 = pneg %p647_p12 }
  0x41   : > { %p654_p2 = por %p653_p10, %p652_p7 }
  0x43   : > { %p655_p4 = pnand %p654_p2, %p648_p13 }
  0xca   : > { %v250_v11 = vpop.xlane.xlu0 %249 }
  0xcb   : > { %v259_v12 = vrot.slane %v250_v11, %v258_v10 }
  0xcd   : > { %554 = vmatmul.mubr.msk.f32.vlgmr.msra.gmra.mrb[0].mxu0 %vm260_vm2, %v259_v12 }
 0x1a0   : > { %v332_v15 = vpop.f32.mrb[0].mxu0 }
 0x1a1   : > { %v333_v16 = vadd.f32 %v332_v15, %v252_v14  ;;  %v555_v17 = vpop.f32.mrb[1].mxu0 }
 0x1a3   : > { %v336_v18 = vmax.f32 %v333_v16, 0.0 }
 0x1a5   : > { %559 = vmatmul.mubr.msk.f32.vlgmr.msra.gmra.mrb[0].mxu1 %vm339_vm4, %v336_v18 }
 0x278   : > { %v413_v20 = vpop.f32.mrb[0].mxu1 }
 0x279   : > { %v414_v21 = vadd.f32 %v413_v20, %v338_v19  ;;  %v560_v22 = vpop.f32.mrb[1].mxu1 }
 0x27b   : > { %v539_v23 = vmul.f32 -1.442695, %v414_v21 }
 0x27d   : > { %611 = vpow2.f32 %v539_v23 }
 0x287   : > { %v612_v24 = vpop.eup %611 }
 0x288   : > { %v420_v25 = vadd.f32 1.0, %v612_v24 }
 0x28a   : > { %613 = vrcp.f32 %v420_v25 }
 0x294   : > { %v614_v27 = vpop.eup %613 }
 0x295   : > { %v426_v28 = vrot.slane %v614_v27, %v425_v26 }
 0x297   : > { %428 = vbcast.lane.b32.xlu0 %v426_v28, 256 }
 0x309   : > { %v429_v33 = vpop.permute.xlu0 %428 }
 0x30a   : > { %v437_v34 = vrot.slane %v429_v33, %v436_v32 }
 0x30c   : > { %v439_v35 = vmul.f32 %v437_v34, %v241_v0 }
 0x30e   : > { %440 = vst [vmem:[%s240_s9] sm:$0xff] %v439_v35 }
 0x30f   : > { %658 = shalt.err (!%p655_p4)
}
 0x310   : > { %s659_s13 = scalar_lea.hbm %s881_s15, 128  ;;  %s663_s26 = scalar_lea.hbm %s930_s5, 256 }
 0x311   : > { %p660_p5 = scmp.ne.s32.totalorder %s881_s15, %s659_s13  ;;  %p664_p0 = scmp.lt.u32.totalorder %s881_s15, %s930_s5 }
 0x312   : > { %p665_p1 = scmp.lt.u32.totalorder %s663_s26, %s659_s13  ;;  %p667_p6 = scmp.lt.u32.totalorder %s659_s13, %s881_s15 }
 0x313   : > { %p661_p8 = pnand %p660_p5, %p939_p11 }
 0x314   : > { %p666_p3 = por %p665_p1, %p664_p0 }
 0x315   : > { %p662_p9 = pneg %p661_p8 }
 0x316   : > { %p668_p12 = por %p667_p6, %p666_p3 }
 0x318   : > { %p669_p13 = pnand %p668_p12, %p662_p9 }
 0x31a   : > { %672 = shalt.err (!%p669_p13)
}
 0x31b   : > { %563 = dma.vmem_to_hbm [thread:$0]  (%p939_p11), %s883_s10, 128, %s881_s15, %s442_s12  }
 0x31c PF: > { %s468_s7 = sand.u32 1, %s699_s18   ;;  %p940_p7 = scmp.ne.s32.totalorder %s935_s6, 0 }
 0x31d   : > { %p941_p10 = scmp.ge.s32.totalorder %s711_s21, 2  ;;  %s469_s9 = scalar_lea.sflag [#allocation4], %s468_s7 }
 0x31f   : > { %p570_p2 = pnand %p941_p10, %p940_p7 }
 0x321   : > { %694 = dma.done.wait (!%p570_p2), %s469_s9, 128  }
 0x322   : > { %696 = vsyncadd (!%p570_p2), %s469_s9, 4294967168  ;;  %p18_p4 = scmp.ge.s32.totalorder %s773_s24, 4   ;;  %s942_s18 = smov %s703_s19 }
 0x323   : > { %s943_s19 = smov %s707_s20  ;;  %s944_s20 = smov %s785_s27 }
 0x324   : > { %s945_s21 = smov %s773_s24  ;;  %20 = sbr.rel (!%p18_p4) target bundleno = 5 (0x5), region = 85 }
 0x32b   :  { %474 = vsyncpa [#allocation3], 1 }
 0x32c   :  { %476 = vsyncpa [#allocation3 + $0x1], 1 }
 0x32d   :  { %477 = vsyncpa [#allocation4], 1 }
 0x32e   :  { %479 = vsyncpa [#allocation4 + $0x1], 1 }

</bundles_post_ra>
